<compile_context>
chip_gen: v5e
topology: v5e:2x2
jax: 0.10.0
libtpu: 0.0.40
codegen_flags: <defaults>
</compile_context>

<pallas_src>
import jax
import jax.numpy as jnp
from jax.experimental import pallas as pl
from jax.experimental.pallas import tpu as pltpu


def _mfm_kernel(a_ref, b_ref, o_ref):
    # Pure VPU elementwise max of the two channel halves.
    o_ref[...] = jnp.maximum(a_ref[...], b_ref[...])


def _factor_half(c: int, hw: int) -> tuple[int, int]:
    """Factor the per-half, per-sample element count L = c*hw into (rows, cols)
    via a contiguous (free) reshape, preferring cols to be a multiple of 128."""
    L = c * hw
    if hw % 128 == 0:
        return c, hw
    if L % 128 == 0:
        # Fold channel into the lane axis (late LightCNN layers: small h*w).
        cols, k = 128, 128
        while k <= min(L, 2048):
            if L % k == 0:
                cols = k
            k += 128
        return L // cols, cols
    # Not lane-alignable: full-extent block is still legal (masked stores).
    return c, hw


def _pick_tile(dim: int, quantum: int, max_elems: int) -> int:
    """Largest multiple of `quantum` dividing `dim` that is <= max_elems;
    falls back to the full dim when no aligned divisor exists."""
    if dim < quantum or dim % quantum != 0:
        return dim
    best, t = quantum, quantum
    while t <= dim:
        if dim % t == 0 and t <= max_elems:
            best = t
        t += quantum
    return best


def max_feature_map(
    x: jax.Array, out_channels: int, *, min_elems_for_pallas: int = 1 << 15
) -> jax.Array:
    """MFM(out_channels): max over the two channel halves of an NCHW tensor."""
    n, c2, h, w = x.shape
    if c2 != 2 * out_channels:
        raise ValueError(
            f"MaxFeatureMap expects exactly 2*out_channels={2 * out_channels} "
            f"input channels, got {c2}"
        )
    c = out_channels
    hw = h * w
    total = n * c * hw  # output element count

    # Tiny activations: a fused XLA maximum beats pallas_call launch overhead.
    if total < min_elems_for_pallas:
        return jnp.maximum(x[:, :c], x[:, c:])

    rows, cols = _factor_half(c, hw)
    itemsize = jnp.dtype(x.dtype).itemsize
    budget = 1 << 20  # ~1 MiB per array tile; 3 arrays x 2 buffers ~ 6 MiB VMEM
    tile_c = _pick_tile(cols, 128, max(128, budget // itemsize))
    tile_r = _pick_tile(rows, 8, max(8, budget // (tile_c * itemsize)))

    # Single contiguous (free) reshape; halves selected purely via index_maps.
    x_r = x.reshape(n, 2, rows, cols)

    grid = (n, rows // tile_r, cols // tile_c)

    out_flat = pl.pallas_call(
        _mfm_kernel,
        out_shape=jax.ShapeDtypeStruct((n, rows, cols), x.dtype),
        grid_spec=pltpu.PrefetchScalarGridSpec(
            num_scalar_prefetch=0,
            grid=grid,
            in_specs=[
                # First channel half.
                pl.BlockSpec((None, None, tile_r, tile_c),
                             lambda b, r, s: (b, 0, r, s)),
                # Second channel half (same array, different "half" index).
                pl.BlockSpec((None, None, tile_r, tile_c),
                             lambda b, r, s: (b, 1, r, s)),
            ],
            out_specs=pl.BlockSpec((None, tile_r, tile_c),
                                   lambda b, r, s: (b, r, s)),
        ),
        compiler_params=pltpu.CompilerParams(
            dimension_semantics=("parallel", "parallel", "parallel")
        ),
    )(x_r, x_r)

    return out_flat.reshape(n, c, h, w)


if __name__ == "__main__":
    key = jax.random.PRNGKey(0)

    # Small case (matches the PyTorch module spec): batch=2, out_channels=4,
    # input channels = 2*out_channels = 8, spatial 16x16, NCHW.
    out_channels = 4
    x = jax.random.normal(key, (2, 2 * out_channels, 16, 16), dtype=jnp.float32)

    # Force the Pallas path (default threshold would route this tiny input to
    # the fused-XLA fallback).
    y = max_feature_map(x, out_channels, min_elems_for_pallas=0)
    y = jax.block_until_ready(y)
    ref = jnp.maximum(x[:, :out_channels], x[:, out_channels:])
    assert y.shape == (2, out_channels, 16, 16)
    assert jnp.allclose(y, ref), "mismatch vs reference (small case)"

    # Slightly larger case to exercise multi-block tiling and channel folding
    # behaviour on a layer-like shape.
    oc2 = 48
    x2 = jax.random.normal(jax.random.PRNGKey(1), (2, 2 * oc2, 32, 32),
                           dtype=jnp.float32)
    y2 = jax.block_until_ready(max_feature_map(x2, oc2, min_elems_for_pallas=0))
    ref2 = jnp.maximum(x2[:, :oc2], x2[:, oc2:])
    assert jnp.allclose(y2, ref2), "mismatch vs reference (tiled case)"

    print("KERNEL_OK")
</pallas_src>

<mosaic_0001>
module attributes {stable_mosaic.version = 11 : i64} {
  func.func @_mfm_kernel(%arg0: i32, %arg1: i32, %arg2: i32, %arg3: memref<1x1x4x256xf32, #tpu.memory_space<vmem>>, %arg4: memref<1x1x4x256xf32, #tpu.memory_space<vmem>>, %arg5: memref<1x4x256xf32, #tpu.memory_space<vmem>>) attributes {dimension_semantics = [#tpu.dimension_semantics<parallel>, #tpu.dimension_semantics<parallel>, #tpu.dimension_semantics<parallel>], iteration_bounds = array<i64: 2, 1, 1>, scalar_prefetch = 0 : i64, scratch_operands = 0 : i64, tpu.core_type = #tpu.core_type<tc>, window_params = [{transform_indices = @transform_0, window_bounds = array<i64: 1, 1, 4, 256>}, {transform_indices = @transform_1, window_bounds = array<i64: 1, 1, 4, 256>}, {transform_indices = @transform_2, window_bounds = array<i64: 1, 4, 256>}]} {
    %c0 = arith.constant 0 : index
    %c0_0 = arith.constant 0 : index
    %c0_1 = arith.constant 0 : index
    %c0_2 = arith.constant 0 : index
    %0 = vector.load %arg3[%c0, %c0_0, %c0_1, %c0_2] : memref<1x1x4x256xf32, #tpu.memory_space<vmem>>, vector<1x1x4x256xf32>
    %1 = vector.shape_cast %0 : vector<1x1x4x256xf32> to vector<4x256xf32>
    %c0_3 = arith.constant 0 : index
    %c0_4 = arith.constant 0 : index
    %c0_5 = arith.constant 0 : index
    %c0_6 = arith.constant 0 : index
    %2 = vector.load %arg4[%c0_3, %c0_4, %c0_5, %c0_6] : memref<1x1x4x256xf32, #tpu.memory_space<vmem>>, vector<1x1x4x256xf32>
    %3 = vector.shape_cast %2 : vector<1x1x4x256xf32> to vector<4x256xf32>
    %4 = arith.maximumf %1, %3 : vector<4x256xf32>
    %c0_7 = arith.constant 0 : index
    %c0_8 = arith.constant 0 : index
    %c0_9 = arith.constant 0 : index
    %5 = vector.load %arg5[%c0_7, %c0_8, %c0_9] : memref<1x4x256xf32, #tpu.memory_space<vmem>>, vector<1x4x256xf32>
    %6 = vector.shape_cast %5 : vector<1x4x256xf32> to vector<4x256xf32>
    %7 = vector.shape_cast %4 : vector<4x256xf32> to vector<1x4x256xf32>
    tpu.vector_store %arg5[%c0_7, %c0_8, %c0_9], %7 {strides = array<i32>} : memref<1x4x256xf32, #tpu.memory_space<vmem>>, vector<1x4x256xf32>,
    return
  }
  func.func @transform_0(%arg0: i32, %arg1: i32, %arg2: i32) -> (i32, i32, i32, i32) {
    %c0_i32 = arith.constant 0 : i32
    %c0_i32_0 = arith.constant 0 : i32
    return %arg0, %c0_i32, %arg1, %arg2 : i32, i32, i32, i32
  }
  func.func @transform_1(%arg0: i32, %arg1: i32, %arg2: i32) -> (i32, i32, i32, i32) {
    %c1_i32 = arith.constant 1 : i32
    %c0_i32 = arith.constant 0 : i32
    return %arg0, %c1_i32, %arg1, %arg2 : i32, i32, i32, i32
  }
  func.func @transform_2(%arg0: i32, %arg1: i32, %arg2: i32) -> (i32, i32, i32) {
    %c0_i32 = arith.constant 0 : i32
    return %arg0, %arg1, %arg2 : i32, i32, i32
  }
}

</mosaic_0001>

<bundles_post_ra>
// kernel: tpu_custom_call.1
= control target key start
LH: loop header
LB: loop body
LE: loop exit
PB: predicated region body
PF: predicated region fallthrough
CT: control target
= control target key end

     0   :  { %7 = vsyncpa [#allocation3], 0  ;;  %s778_s0 = inlined_call_operand.hbm [shape: f32[2,2,4,256], index: 0, kind: input, shape index: {}]   ;;  %s779_s1 = inlined_call_operand.hbm [shape: f32[2,2,4,256], index: 1, kind: input, shape index: {}]   ;;  %s780_s2 = inlined_call_operand.hbm [shape: f32[2,4,256], index: 2, kind: output, shape index: {}]  }
   0x1   :  { %9 = vsyncpa [#allocation3 + $0x1], 0 }
   0x2   :  { %10 = vsyncpa [#allocation6], 0 }
   0x3   :  { %12 = vsyncpa [#allocation6 + $0x1], 0 }
   0x4   :  { %13 = vsyncpa [#allocation4], 0 }
   0x5   :  { %15 = vsyncpa [#allocation4 + $0x1], 0  ;;  %s642_s9 = smov 0   ;;  %s644_s10 = smov 0  }
   0x6   :  { %s646_s11 = smov 0   ;;  %s648_s12 = smov 0  }
   0x7   :  { %s650_s13 = smov 0   ;;  %s652_s14 = smov 0  }
   0x8 LB: > { %s390_s15 = sadd.s32 4294967295, %s625_s14   ;;  %s391_s16 = sadd.s32 4294967294, %s625_s14   ;;  %s625_s14 = sphi %s652_s14, %s21_s14   ;;  %s621_s13 = sphi %s650_s13, %s790_s13   ;;  %s617_s12 = sphi %s648_s12, %s789_s12   ;;  %s613_s11 = sphi %s646_s11, %s788_s11   ;;  %s609_s10 = sphi %s644_s10, %s787_s10   ;;  %s605_s9 = sphi %s642_s9, %s786_s9  }
   0x9   : > { %s40_s17 = sadd.s32 1, %s621_s13  ;;  %s51_s18 = sadd.s32 1, %s613_s11 }
   0xa   : > { %p42_p0 = scmp.ge.s32.totalorder %s40_s17, 2  ;;  %p58_p1 = scmp.ne.s32.totalorder %s613_s11, %s609_s10 }
   0xb   : > { %p59_p2 = scmp.eq.s32.totalorder %s625_s14, 0  ;;  %p64_p3 = scmp.ne.s32.totalorder %s609_s10, %s605_s9 }
   0xc   : > { %s792_s17 = smov (%p42_p0, %s40_s17), 0  ;;  %p65_p5 = scmp.eq.s32.totalorder %s390_s15, 0 }
   0xd   : > { %p683_p4 = por %p59_p2, %p58_p1  ;;  %s44_s20 = ssub.s32 %s621_s13, %s792_s17 }
   0xe   : > { %p122_p6 = scmp.eq.s32.totalorder %s390_s15, 1  ;;  %p49_p7 = scmp.eq.s32.totalorder %s44_s20, 0 }
   0xf   : > { %p689_p8 = por %p65_p5, %p64_p3  ;;  %p128_p10 = scmp.eq.s32.totalorder %s391_s16, 1 }
  0x10   : > { %p693_p9 = por %p122_p6, %p58_p1  ;;  %p393_p12 = scmp.ge.s32.totalorder %s625_s14, 2 }
  0x11   : > { %s698_s23 = scalar_select %p49_p7, %s613_s11, %s51_s18  }
  0x12   : > { %p700_p11 = por %p128_p10, %p64_p3  ;;  %p429_p13 = scmp.lt.s32.totalorder %s625_s14, 2 }
  0x13   : > { %s148_s25 = sand.u32 1, %s613_s11   ;;  %s409_s27 = sshll.u32 %s621_s13, 4 }
  0x14   : > { %s394_s26 = sshll.u32 %s148_s25, 3  ;;  %s161_s30 = scalar_lea.hbm %s778_s0, %s409_s27 }
  0x15   : > { %s152_s3 = scalar_lea.vmem [#allocation2], %s394_s26  ;;  %s163_s5 = sshll.u32 %s161_s30, 4  ;;  %s164_s5 = int_to_ptr.hbm [resolvable:$true] %s163_s5 }
  0x16   : > { %s165_s4 = sshll.u32 %s152_s3, 4  ;;  %p713_p0 = pnand %p429_p13, %p683_p4  ;;  %s166_s4 = int_to_ptr.vmem [resolvable:$true] %s165_s4 }
  0x17   : > { %p400_p1 = scmp.ge.s32.totalorder %s625_s14, 1  ;;  %p195_p2 = scmp.lt.s32.totalorder %s625_s14, 3 }
  0x18   : > { %s149_s7 = scalar_lea.sflag [#allocation3], %s148_s25  ;;  %s316_s16 = scalar_lea.hbm %s779_s1, %s409_s27 }
  0x19   : > { %421 = dma.hbm_to_vmem [thread:$0]  (!%p713_p0), %s164_s5, 128, %s166_s4, %s149_s7  }
  0x1a   : > { %p196_p3 = pnand %p400_p1, %p195_p2  ;;  %s176_s18 = scalar_lea.vmem [#allocation5], %s394_s26 }
  0x1b   : > { %s190_s20 = sshll.u32 %s176_s18, 4  ;;  %s317_s28 = scalar_lea.hbm %s316_s16, 8  ;;  %s191_s20 = int_to_ptr.vmem [resolvable:$true] %s190_s20 }
  0x1c   : > { %s188_s19 = sshll.u32 %s317_s28, 4  ;;  %s173_s29 = scalar_lea.sflag [#allocation6], %s148_s25  ;;  %s189_s19 = int_to_ptr.hbm [resolvable:$true] %s188_s19 }
  0x1d   : > { %424 = dma.hbm_to_vmem [thread:$0]  (!%p713_p0), %s189_s19, 128, %s191_s20, %s173_s29  }
  0x1e   : > { %199 = sbr.rel (%p196_p3) target bundleno = 53 (0x35), region = 28  ;;  %s727_s30 = sand.u32 (!%p196_p3), 1, %s609_s10  }
  0x1f   : > { %s401_s3 = sshll.u32 (!%p196_p3), %s727_s30, 3  ;;  %s202_s4 = scalar_lea.sflag (!%p196_p3), [#allocation3], %s727_s30 }
  0x20   : > { %s205_s5 = scalar_lea.vmem (!%p196_p3), [#allocation2], %s401_s3 }
  0x23   : > { %592 = dma.done.wait (%p689_p8), %s202_s4, 128  }
  0x24   : > { %594 = vsyncadd (%p689_p8), %s202_s4, 4294967168  ;;  %s212_s25 = scalar_lea.sflag [#allocation6], %s727_s30  ;;  %s215_s26 = scalar_lea.vmem [#allocation5], %s401_s3 }
  0x25   : > { %596 = dma.done.wait (%p689_p8), %s212_s25, 128  }
  0x26   : > { %598 = vsyncadd (%p689_p8), %s212_s25, 4294967168  ;;  %s411_s27 = sshll.u32 %s617_s12, 3  ;;  %s241_s15 = scalar_lea.vmem [#allocation7], %s401_s3  ;;  %v245_v0 = vld [vmem:[%s205_s5] sm:$0xff]  ;;  %v246_v1 = vld [vmem:[%s215_s26] sm:$0xff] }
  0x27   : > { %s265_s8 = scalar_lea.hbm %s780_s2, %s411_s27  ;;  %s267_s16 = sshll.u32 %s241_s15, 4  ;;  %v247_v2 = vmax.f32 %v245_v0, %v246_v1  ;;  %s268_s16 = int_to_ptr.vmem [resolvable:$true] %s267_s16 }
  0x28   : > { %s269_s18 = sshll.u32 %s265_s8, 4  ;;  %s250_s20 = scalar_lea.sflag [#allocation4], %s727_s30  ;;  %s270_s18 = int_to_ptr.hbm [resolvable:$true] %s269_s18 }
  0x29   : > { %248 = vst [vmem:[%s241_s15] sm:$0xff] %v247_v2  ;;  %s553_s21 = sshra.s32 %s270_s18, 4  ;;  %s559_s29 = scalar_lea.hbm %s780_s2, 16  ;;  %s554_s21 = int_to_ptr.hbm [resolvable:$true] %s553_s21 }
  0x2a   : > { %s555_s28 = scalar_lea.hbm %s554_s21, 8  ;;  %p560_p7 = scmp.lt.s32.totalorder %s554_s21, %s780_s2 }
  0x2b   : > { %p556_p4 = scmp.ne.s32.totalorder %s554_s21, %s555_s28  ;;  %p561_p8 = scmp.lt.s32.totalorder %s559_s29, %s555_s28 }
  0x2d   : > { %p557_p5 = pnand %p556_p4, %p693_p9  ;;  %p562_p10 = por %p561_p8, %p560_p7 }
  0x2f   : > { %p558_p6 = pneg %p557_p5 }
  0x31   : > { %p563_p13 = pnand %p562_p10, %p558_p6 }
  0x33   : > { %566 = shalt.err (!%p563_p13)
}
  0x34   : > { %416 = dma.vmem_to_hbm [thread:$0]  (%p693_p9), %s268_s16, 128, %s270_s18, %s250_s20  }
  0x35 PF: > { %s281_s30 = sand.u32 1, %s605_s9   ;;  %p426_p0 = pnand %p393_p12, %p700_p11 }
  0x36   : > { %s282_s5 = scalar_lea.sflag [#allocation4], %s281_s30 }
  0x37   : > { %p427_p1 = pneg %p426_p0 }
  0x39   : > { %600 = dma.done.wait (%p427_p1), %s282_s5, 128  }
  0x3a   : > { %602 = vsyncadd (%p427_p1), %s282_s5, 4294967168  ;;  %s21_s14 = sadd.s32 1, %s625_s14   ;;  %s786_s9 = smov %s609_s10 }
  0x3b   : > { %p18_p2 = scmp.ge.s32.totalorder %s21_s14, 4   ;;  %s787_s10 = smov %s613_s11 }
  0x3c   : > { %s788_s11 = smov %s698_s23  ;;  %s789_s12 = smov %s621_s13 }
  0x3d   : > { %s790_s13 = smov %s792_s17  ;;  %20 = sbr.rel (!%p18_p2) target bundleno = 8 (0x8), region = 86 }
  0x42   :  { %288 = vsyncpa [#allocation3], 1 }
  0x43   :  { %290 = vsyncpa [#allocation3 + $0x1], 1 }
  0x44   :  { %291 = vsyncpa [#allocation6], 1 }
  0x45   :  { %293 = vsyncpa [#allocation6 + $0x1], 1 }
  0x46   :  { %294 = vsyncpa [#allocation4], 1 }
  0x47   :  { %296 = vsyncpa [#allocation4 + $0x1], 1 }

</bundles_post_ra>
